<compile_context>
chip_gen: v6e
topology: v6e:2x2x1
jax: 0.10.0
libtpu: 0.0.40
codegen_flags: <defaults>
</compile_context>

<pallas_src>
import jax
import jax.numpy as jnp
from jax.experimental import pallas as pl
from jax.experimental.pallas import tpu as pltpu

_LANES = 128


def _round_up(x, m):
    return ((x + m - 1) // m) * m


def _pad2(a, rows, cols, dtype):
    out = jnp.zeros((rows, cols), dtype)
    return out.at[: a.shape[0], : a.shape[1]].set(a.astype(dtype))


_VMEM_LIMIT_CACHE = None


def _vmem_limit_bytes():
    """Generation-aware VMEM limit (~70% of physical, capped), 32 MiB fallback."""
    global _VMEM_LIMIT_CACHE
    if _VMEM_LIMIT_CACHE is None:
        limit = 32 * 1024 * 1024
        try:
            cap = int(pltpu.get_tpu_info().vmem_capacity_bytes)
            if cap > 0:
                limit = min((cap * 7) // 10, 100 * 1024 * 1024)
        except Exception:
            pass
        _VMEM_LIMIT_CACHE = int(limit)
    return _VMEM_LIMIT_CACHE


def _pick_tiles(n_pad):
    """tm/tk: multiples of 128 dividing n_pad; tm<=512 and (if possible) <=n_pad//2
    so v7x's two TensorCores both get row tiles; tk as deep as possible (<=1024)."""
    divs = [d for d in range(_LANES, n_pad + 1, _LANES) if n_pad % d == 0]
    tm_c = [d for d in divs if d <= 512 and (n_pad < 2 * _LANES or d <= n_pad // 2)]
    tm = max(tm_c) if tm_c else min(divs)
    tk_c = [d for d in divs if d <= 1024]
    tk = max(tk_c) if tk_c else min(divs)
    return tm, tk


# ---------------------------------------------------------------------------
# Kernels
# ---------------------------------------------------------------------------
def gcn_layer_kernel(a_ref, h_ref, w_ref, b_ref, out_ref, acc_ref):
    """out[i] = relu( (sum_k A[i,k] @ H[k]) @ W + b )  -- one GCNConv + ReLU."""
    k = pl.program_id(1)

    @pl.when(k == 0)
    def _():
        acc_ref[...] = jnp.zeros_like(acc_ref)

    acc_ref[...] += jnp.dot(a_ref[...], h_ref[...],
                            preferred_element_type=jnp.float32)

    @pl.when(k == pl.num_programs(1) - 1)
    def _():
        t = jnp.dot(acc_ref[...].astype(jnp.bfloat16), w_ref[...],
                    preferred_element_type=jnp.float32) + b_ref[...]
        out_ref[...] = jnp.maximum(t, 0.0).astype(out_ref.dtype)


def gcn_final_kernel(a_ref, h_ref, w3_ref, b3_ref, wf_ref, bf_ref,
                     wo_ref, bo_ref, out_ref, acc_ref):
    """Third GCNConv(+ReLU) + fc1(+ReLU) + 1-wide head fused into the finalize."""
    k = pl.program_id(1)

    @pl.when(k == 0)
    def _():
        acc_ref[...] = jnp.zeros_like(acc_ref)

    acc_ref[...] += jnp.dot(a_ref[...], h_ref[...],
                            preferred_element_type=jnp.float32)

    @pl.when(k == pl.num_programs(1) - 1)
    def _():
        h3 = jnp.dot(acc_ref[...].astype(jnp.bfloat16), w3_ref[...],
                     preferred_element_type=jnp.float32) + b3_ref[...]
        h3 = jnp.maximum(h3, 0.0)
        hf = jnp.dot(h3.astype(jnp.bfloat16), wf_ref[...],
                     preferred_element_type=jnp.float32) + bf_ref[...]
        hf = jnp.maximum(hf, 0.0)
        # Head: lane-wise multiply + cross-lane reduce (VPU/XLU), not a 1-column
        # MXU matmul.  Padded lanes of wo are zero.
        y = jnp.sum(hf * wo_ref[...], axis=-1, keepdims=True) + bo_ref[...]
        # Lane-dense store: broadcast the single column across the 128-wide block.
        out_ref[...] = jnp.broadcast_to(y, out_ref.shape).astype(out_ref.dtype)


def gcn_fused_kernel(a_ref, h_ref, w1_ref, b1_ref, w2_ref, b2_ref, w3_ref, b3_ref,
                     wf_ref, bf_ref, wo_ref, bo_ref, out_ref):
    """A-resident fused forward: A_hat, activations and weights all VMEM-resident."""
    a = a_ref[...]
    h = h_ref[...]
    for w_ref, b_ref in ((w1_ref, b1_ref), (w2_ref, b2_ref), (w3_ref, b3_ref)):
        t = jnp.dot(a, h, preferred_element_type=jnp.float32)        # A @ H
        t = jnp.dot(t.astype(jnp.bfloat16), w_ref[...],
                    preferred_element_type=jnp.float32) + b_ref[...]  # @ W + b
        h = jnp.maximum(t, 0.0).astype(jnp.bfloat16)                  # ReLU
    hf = jnp.maximum(jnp.dot(h, wf_ref[...],
                             preferred_element_type=jnp.float32) + bf_ref[...], 0.0)
    y = jnp.sum(hf * wo_ref[...], axis=-1, keepdims=True) + bo_ref[...]
    out_ref[...] = jnp.broadcast_to(y, out_ref.shape).astype(out_ref.dtype)


# ---------------------------------------------------------------------------
# pallas_call builders
# ---------------------------------------------------------------------------
def _gcn_layer(a_pad, h, w, b, *, tm, tk, vmem_limit):
    n_pad = a_pad.shape[0]
    f_in = h.shape[1]
    f_out = w.shape[1]
    grid = (n_pad // tm, n_pad // tk)
    resident = lambda i, k: (0, 0)

    flops = 2 * n_pad * n_pad * f_in + 2 * n_pad * f_in * f_out
    bytes_accessed = (n_pad * n_pad * 2                     # A (bf16)
                      + grid[0] * n_pad * f_in * 2          # H re-read per row tile
                      + f_in * f_out * 2 + f_out * 4        # W, b
                      + n_pad * f_out * 2)                  # out (bf16)

    return pl.pallas_call(
        gcn_layer_kernel,
        out_shape=jax.ShapeDtypeStruct((n_pad, f_out), jnp.bfloat16),
        grid_spec=pltpu.PrefetchScalarGridSpec(
            num_scalar_prefetch=0,
            grid=grid,
            in_specs=[
                pl.BlockSpec((tm, tk), lambda i, k: (i, k)),    # A tile
                pl.BlockSpec((tk, f_in), lambda i, k: (k, 0)),  # H K-slab
                pl.BlockSpec((f_in, f_out), resident),          # W  (resident)
                pl.BlockSpec((1, f_out), resident),             # b  (resident)
            ],
            out_specs=pl.BlockSpec((tm, f_out), lambda i, k: (i, 0)),
            scratch_shapes=[pltpu.VMEM((tm, f_in), jnp.float32)],
        ),
        compiler_params=pltpu.CompilerParams(
            dimension_semantics=("parallel", "arbitrary"),
            vmem_limit_bytes=vmem_limit,
        ),
        cost_estimate=pl.CostEstimate(flops=flops, transcendentals=0,
                                      bytes_accessed=bytes_accessed),
    )(a_pad, h, w, b)


def _gcn_final(a_pad, h, w3, b3, wf, bf, wo, bo, *, tm, tk, vmem_limit):
    n_pad = a_pad.shape[0]
    f_in = h.shape[1]
    hp = w3.shape[1]
    grid = (n_pad // tm, n_pad // tk)
    resident = lambda i, k: (0, 0)

    flops = (2 * n_pad * n_pad * f_in
             + 2 * n_pad * f_in * hp
             + 2 * n_pad * hp * hp
             + 3 * n_pad * hp)
    bytes_accessed = (n_pad * n_pad * 2
                      + grid[0] * n_pad * f_in * 2
                      + (f_in * hp + hp * hp) * 2 + 3 * hp * 4
                      + n_pad * _LANES * 4)

    return pl.pallas_call(
        gcn_final_kernel,
        out_shape=jax.ShapeDtypeStruct((n_pad, _LANES), jnp.float32),
        grid_spec=pltpu.PrefetchScalarGridSpec(
            num_scalar_prefetch=0,
            grid=grid,
            in_specs=[
                pl.BlockSpec((tm, tk), lambda i, k: (i, k)),    # A tile
                pl.BlockSpec((tk, f_in), lambda i, k: (k, 0)),  # H K-slab
                pl.BlockSpec((f_in, hp), resident),             # W3
                pl.BlockSpec((1, hp), resident),                # b3
                pl.BlockSpec((hp, hp), resident),               # Wf
                pl.BlockSpec((1, hp), resident),                # bf
                pl.BlockSpec((1, hp), resident),                # wo (row)
                pl.BlockSpec((1, 1), resident),                 # bo
            ],
            out_specs=pl.BlockSpec((tm, _LANES), lambda i, k: (i, 0)),
            scratch_shapes=[pltpu.VMEM((tm, f_in), jnp.float32)],
        ),
        compiler_params=pltpu.CompilerParams(
            dimension_semantics=("parallel", "arbitrary"),
            vmem_limit_bytes=vmem_limit,
        ),
        cost_estimate=pl.CostEstimate(flops=flops, transcendentals=0,
                                      bytes_accessed=bytes_accessed),
    )(a_pad, h, w3, b3, wf, bf, wo, bo)


def _gcn_fused(a_pad, h0, w1, b1, w2, b2, w3, b3, wf, bf, wo, bo, *, vmem_limit):
    n_pad = a_pad.shape[0]
    fp = h0.shape[1]
    hp = w1.shape[1]
    flops = (2 * n_pad * n_pad * (fp + 2 * hp)
             + 2 * n_pad * (fp * hp + 2 * hp * hp)
             + 2 * n_pad * hp * hp + 3 * n_pad * hp)
    bytes_accessed = (n_pad * n_pad * 2 + n_pad * fp * 2
                      + (fp * hp + 3 * hp * hp) * 2 + n_pad * _LANES * 4)
    # Grid-less call: whole arrays live in VMEM (no pipelining, no double-buffer).
    return pl.pallas_call(
        gcn_fused_kernel,
        out_shape=jax.ShapeDtypeStruct((n_pad, _LANES), jnp.float32),
        compiler_params=pltpu.CompilerParams(vmem_limit_bytes=vmem_limit),
        cost_estimate=pl.CostEstimate(flops=flops, transcendentals=0,
                                      bytes_accessed=bytes_accessed),
    )(a_pad, h0, w1, b1, w2, b2, w3, b3, wf, bf, wo, bo)


# ---------------------------------------------------------------------------
# Glue: normalized dense adjacency exactly like PyG's gcn_norm
# (add self loops w/ weight 1, symmetric D^-1/2 normalization, deg==0 -> 0),
# scattered directly into the padded output buffer.
# ---------------------------------------------------------------------------
def build_norm_adj(edge_index, edge_weight, num_nodes, n_pad=None, dtype=jnp.float32):
    if n_pad is None:
        n_pad = num_nodes
    row = edge_index[0]
    col = edge_index[1]
    ew = edge_weight.astype(jnp.float32)

    loop_idx = jnp.arange(num_nodes, dtype=edge_index.dtype)
    row = jnp.concatenate([row, loop_idx])
    col = jnp.concatenate([col, loop_idx])
    ew = jnp.concatenate([ew, jnp.ones((num_nodes,), jnp.float32)])

    deg = jnp.zeros((num_nodes,), jnp.float32).at[col].add(ew)
    deg_inv_sqrt = jnp.where(deg > 0, jax.lax.rsqrt(jnp.maximum(deg, 1e-30)), 0.0)
    norm = deg_inv_sqrt[row] * ew * deg_inv_sqrt[col]

    # out[i] = sum_{edges j->i} norm * h[j]  =>  A_hat[i, j] += norm
    a = jnp.zeros((n_pad, n_pad), jnp.float32).at[col, row].add(norm)
    return a.astype(dtype)


# ---------------------------------------------------------------------------
# Wrapper
# ---------------------------------------------------------------------------
def gcn_importance_gnn_forward(x, edge_index, edge_attr, params, *, force_tiled=False):
    n, fin = x.shape
    hid = params["w1"].shape[1]

    fp = _round_up(fin, _LANES)
    hp = _round_up(hid, _LANES)
    n_pad = _round_up(n, _LANES)
    vmem_limit = _vmem_limit_bytes()

    # TODO(synk): for a static graph, cache a_pad across calls instead of
    # redoing the O(N^2) dense scatter every forward.
    a_pad = build_norm_adj(edge_index, edge_attr, n, n_pad=n_pad, dtype=jnp.bfloat16)
    h0 = jnp.zeros((n_pad, fp), jnp.bfloat16).at[:n, :fin].set(x.astype(jnp.bfloat16))

    w1 = _pad2(params["w1"], fp, hp, jnp.bfloat16)
    w2 = _pad2(params["w2"], hp, hp, jnp.bfloat16)
    w3 = _pad2(params["w3"], hp, hp, jnp.bfloat16)
    wf = _pad2(params["wf"], hp, hp, jnp.bfloat16)
    b1 = _pad2(params["b1"], 1, hp, jnp.float32)
    b2 = _pad2(params["b2"], 1, hp, jnp.float32)
    b3 = _pad2(params["b3"], 1, hp, jnp.float32)
    bf = _pad2(params["bf"], 1, hp, jnp.float32)
    wo = _pad2(params["wo"].T, 1, hp, jnp.float32)        # head weight as lane row
    bo = params["bo"].astype(jnp.float32).reshape(1, 1)

    # Fused A-resident path when the whole problem comfortably fits VMEM.
    fused_bytes = (2 * n_pad * n_pad                      # A (bf16), VMEM-resident
                   + 10 * n_pad * max(fp, hp) * 4         # activations / f32 temps
                   + 2 * (fp * hp + 3 * hp * hp))         # weights
    use_fused = (not force_tiled) and fused_bytes <= vmem_limit // 2

    if use_fused:
        y = _gcn_fused(a_pad, h0, w1, b1, w2, b2, w3, b3, wf, bf, wo, bo,
                       vmem_limit=vmem_limit)
    else:
        tm, tk = _pick_tiles(n_pad)
        h = _gcn_layer(a_pad, h0, w1, b1, tm=tm, tk=tk, vmem_limit=vmem_limit)
        h = _gcn_layer(a_pad, h, w2, b2, tm=tm, tk=tk, vmem_limit=vmem_limit)
        y = _gcn_final(a_pad, h, w3, b3, wf, bf, wo, bo,
                       tm=tm, tk=tk, vmem_limit=vmem_limit)

    # PyTorch .squeeze(): drop the size-1 feature dim -> [N]
    return y[:n, 0]


# ---------------------------------------------------------------------------
# Pure-JAX f32 reference (for correctness check)
# ---------------------------------------------------------------------------
def reference_forward(x, edge_index, edge_attr, params):
    a = build_norm_adj(edge_index, edge_attr, x.shape[0])
    h = x.astype(jnp.float32)
    for wk, bk in (("w1", "b1"), ("w2", "b2"), ("w3", "b3")):
        h = jnp.maximum(a @ (h @ params[wk]) + params[bk], 0.0)
    h = jnp.maximum(h @ params["wf"] + params["bf"], 0.0)
    return (h @ params["wo"] + params["bo"]).reshape(-1)


# ---------------------------------------------------------------------------
# Deterministic parameter init (shapes follow the module's __init__)
# ---------------------------------------------------------------------------
def init_params(key, in_channels, hidden_channels):
    ks = jax.random.split(key, 10)

    def unif(k, shape, scale):
        return jax.random.uniform(k, shape, jnp.float32, -scale, scale)

    h = hidden_channels
    return {
        "w1": unif(ks[0], (in_channels, h), 0.1), "b1": unif(ks[1], (1, h), 0.1),
        "w2": unif(ks[2], (h, h), 0.1),           "b2": unif(ks[3], (1, h), 0.1),
        "w3": unif(ks[4], (h, h), 0.1),           "b3": unif(ks[5], (1, h), 0.1),
        "wf": unif(ks[6], (h, h), 0.1),           "bf": unif(ks[7], (1, h), 0.1),
        "wo": unif(ks[8], (h, 1), 0.1),           "bo": unif(ks[9], (1, 1), 0.1),
    }


if __name__ == "__main__":
    key = jax.random.PRNGKey(0)
    k_x, k_e, k_w, k_p, k_x2, k_e2, k_w2 = jax.random.split(key, 7)

    # --- small graph: exercises the fused A-resident single-call path -------
    num_nodes, in_channels, hidden_channels, num_edges = 16, 4, 32, 40
    x = jax.random.normal(k_x, (num_nodes, in_channels), jnp.float32)
    edge_index = jax.random.randint(k_e, (2, num_edges), 0, num_nodes, jnp.int32)
    edge_attr = jax.random.uniform(k_w, (num_edges,), jnp.float32, 0.1, 1.0)
    params = init_params(k_p, in_channels, hidden_channels)

    forward = jax.jit(gcn_importance_gnn_forward, static_argnames=("force_tiled",))
    out = forward(x, edge_index, edge_attr, params)
    jax.block_until_ready(out)
    assert out.shape == (num_nodes,)

    ref = reference_forward(x, edge_index, edge_attr, params)
    assert jnp.allclose(out, ref, atol=1e-2, rtol=2e-2), (out, ref)

    # --- larger graph, forced tiled: exercises the K-swept multi-tile path --
    n2, e2 = 1100, 6000            # n_pad = 1152 -> tm = 384, tk = 384, grid (3, 3)
    x2 = jax.random.normal(k_x2, (n2, in_channels), jnp.float32)
    ei2 = jax.random.randint(k_e2, (2, e2), 0, n2, jnp.int32)
    ea2 = jax.random.uniform(k_w2, (e2,), jnp.float32, 0.1, 1.0)

    out2 = forward(x2, ei2, ea2, params, force_tiled=True)
    jax.block_until_ready(out2)
    assert out2.shape == (n2,)

    ref2 = reference_forward(x2, ei2, ea2, params)
    assert jnp.allclose(out2, ref2, atol=5e-2, rtol=5e-2), \
        float(jnp.max(jnp.abs(out2 - ref2)))

    print("KERNEL_OK")
</pallas_src>

<mosaic_0001>
module attributes {stable_mosaic.version = 11 : i64} {
  func.func private @main(%arg0: i32) attributes {dimension_semantics = [#tpu.dimension_semantics<core_parallel>], iteration_bounds = array<i64: 2>, tpu.core_type = #tpu.core_type<sc_scalar_subcore>, window_params = []} {
    return
  }
}

module attributes {stable_mosaic.version = 11 : i64} {
  func.func private @main(%arg0: i32) attributes {dimension_semantics = [#tpu.dimension_semantics<core_parallel>], iteration_bounds = array<i64: 2>, tpu.core_type = #tpu.core_type<sc_scalar_subcore>, window_params = []} {
    return
  }
}

module attributes {stable_mosaic.version = 11 : i64} {
  func.func @gcn_fused_kernel(%arg0: memref<128x128xbf16, #tpu.memory_space<vmem>>, %arg1: memref<128x128xbf16, #tpu.memory_space<vmem>>, %arg2: memref<128x128xbf16, #tpu.memory_space<vmem>>, %arg3: memref<1x128xf32, #tpu.memory_space<vmem>>, %arg4: memref<128x128xbf16, #tpu.memory_space<vmem>>, %arg5: memref<1x128xf32, #tpu.memory_space<vmem>>, %arg6: memref<128x128xbf16, #tpu.memory_space<vmem>>, %arg7: memref<1x128xf32, #tpu.memory_space<vmem>>, %arg8: memref<128x128xbf16, #tpu.memory_space<vmem>>, %arg9: memref<1x128xf32, #tpu.memory_space<vmem>>, %arg10: memref<1x128xf32, #tpu.memory_space<vmem>>, %arg11: memref<1x1xf32, #tpu.memory_space<vmem>>, %arg12: memref<128x128xf32, #tpu.memory_space<vmem>>) attributes {dimension_semantics = [], scalar_prefetch = 0 : i64, scratch_operands = 0 : i64, tpu.core_type = #tpu.core_type<tc>} {
    %c0 = arith.constant 0 : index
    %c0_0 = arith.constant 0 : index
    %0 = vector.load %arg0[%c0, %c0_0] : memref<128x128xbf16, #tpu.memory_space<vmem>>, vector<128x128xbf16>
    %c0_1 = arith.constant 0 : index
    %c0_2 = arith.constant 0 : index
    %1 = vector.load %arg1[%c0_1, %c0_2] : memref<128x128xbf16, #tpu.memory_space<vmem>>, vector<128x128xbf16>
    %cst = arith.constant dense<0.000000e+00> : vector<128x128xf32>
    %2 = tpu.matmul %0, %1, %cst {dimension_numbers = #tpu.dot_dimension_numbers<[1], [0], [0], [1], [0, 0, 1, 1], [], []>} : vector<128x128xbf16>, vector<128x128xbf16>, vector<128x128xf32> -> vector<128x128xf32>
    %3 = arith.truncf %2 : vector<128x128xf32> to vector<128x128xbf16>
    %c0_3 = arith.constant 0 : index
    %c0_4 = arith.constant 0 : index
    %4 = vector.load %arg2[%c0_3, %c0_4] : memref<128x128xbf16, #tpu.memory_space<vmem>>, vector<128x128xbf16>
    %cst_5 = arith.constant dense<0.000000e+00> : vector<128x128xf32>
    %5 = tpu.matmul %3, %4, %cst_5 {dimension_numbers = #tpu.dot_dimension_numbers<[1], [0], [0], [1], [0, 0, 1, 1], [], []>} : vector<128x128xbf16>, vector<128x128xbf16>, vector<128x128xf32> -> vector<128x128xf32>
    %c0_6 = arith.constant 0 : index
    %c0_7 = arith.constant 0 : index
    %6 = vector.load %arg3[%c0_6, %c0_7] : memref<1x128xf32, #tpu.memory_space<vmem>>, vector<1x128xf32>
    %7 = vector.broadcast %6 : vector<1x128xf32> to vector<128x128xf32>
    %8 = arith.addf %5, %7 : vector<128x128xf32>
    %cst_8 = arith.constant 0.000000e+00 : f32
    %9 = vector.broadcast %cst_8 : f32 to vector<128x128xf32>
    %10 = arith.maximumf %8, %9 : vector<128x128xf32>
    %11 = arith.truncf %10 : vector<128x128xf32> to vector<128x128xbf16>
    %cst_9 = arith.constant dense<0.000000e+00> : vector<128x128xf32>
    %12 = tpu.matmul %0, %11, %cst_9 {dimension_numbers = #tpu.dot_dimension_numbers<[1], [0], [0], [1], [0, 0, 1, 1], [], []>} : vector<128x128xbf16>, vector<128x128xbf16>, vector<128x128xf32> -> vector<128x128xf32>
    %13 = arith.truncf %12 : vector<128x128xf32> to vector<128x128xbf16>
    %c0_10 = arith.constant 0 : index
    %c0_11 = arith.constant 0 : index
    %14 = vector.load %arg4[%c0_10, %c0_11] : memref<128x128xbf16, #tpu.memory_space<vmem>>, vector<128x128xbf16>
    %cst_12 = arith.constant dense<0.000000e+00> : vector<128x128xf32>
    %15 = tpu.matmul %13, %14, %cst_12 {dimension_numbers = #tpu.dot_dimension_numbers<[1], [0], [0], [1], [0, 0, 1, 1], [], []>} : vector<128x128xbf16>, vector<128x128xbf16>, vector<128x128xf32> -> vector<128x128xf32>
    %c0_13 = arith.constant 0 : index
    %c0_14 = arith.constant 0 : index
    %16 = vector.load %arg5[%c0_13, %c0_14] : memref<1x128xf32, #tpu.memory_space<vmem>>, vector<1x128xf32>
    %17 = vector.broadcast %16 : vector<1x128xf32> to vector<128x128xf32>
    %18 = arith.addf %15, %17 : vector<128x128xf32>
    %cst_15 = arith.constant 0.000000e+00 : f32
    %19 = vector.broadcast %cst_15 : f32 to vector<128x128xf32>
    %20 = arith.maximumf %18, %19 : vector<128x128xf32>
    %21 = arith.truncf %20 : vector<128x128xf32> to vector<128x128xbf16>
    %cst_16 = arith.constant dense<0.000000e+00> : vector<128x128xf32>
    %22 = tpu.matmul %0, %21, %cst_16 {dimension_numbers = #tpu.dot_dimension_numbers<[1], [0], [0], [1], [0, 0, 1, 1], [], []>} : vector<128x128xbf16>, vector<128x128xbf16>, vector<128x128xf32> -> vector<128x128xf32>
    %23 = arith.truncf %22 : vector<128x128xf32> to vector<128x128xbf16>
    %c0_17 = arith.constant 0 : index
    %c0_18 = arith.constant 0 : index
    %24 = vector.load %arg6[%c0_17, %c0_18] : memref<128x128xbf16, #tpu.memory_space<vmem>>, vector<128x128xbf16>
    %cst_19 = arith.constant dense<0.000000e+00> : vector<128x128xf32>
    %25 = tpu.matmul %23, %24, %cst_19 {dimension_numbers = #tpu.dot_dimension_numbers<[1], [0], [0], [1], [0, 0, 1, 1], [], []>} : vector<128x128xbf16>, vector<128x128xbf16>, vector<128x128xf32> -> vector<128x128xf32>
    %c0_20 = arith.constant 0 : index
    %c0_21 = arith.constant 0 : index
    %26 = vector.load %arg7[%c0_20, %c0_21] : memref<1x128xf32, #tpu.memory_space<vmem>>, vector<1x128xf32>
    %27 = vector.broadcast %26 : vector<1x128xf32> to vector<128x128xf32>
    %28 = arith.addf %25, %27 : vector<128x128xf32>
    %cst_22 = arith.constant 0.000000e+00 : f32
    %29 = vector.broadcast %cst_22 : f32 to vector<128x128xf32>
    %30 = arith.maximumf %28, %29 : vector<128x128xf32>
    %31 = arith.truncf %30 : vector<128x128xf32> to vector<128x128xbf16>
    %c0_23 = arith.constant 0 : index
    %c0_24 = arith.constant 0 : index
    %32 = vector.load %arg8[%c0_23, %c0_24] : memref<128x128xbf16, #tpu.memory_space<vmem>>, vector<128x128xbf16>
    %cst_25 = arith.constant dense<0.000000e+00> : vector<128x128xf32>
    %33 = tpu.matmul %31, %32, %cst_25 {dimension_numbers = #tpu.dot_dimension_numbers<[1], [0], [0], [1], [0, 0, 1, 1], [], []>} : vector<128x128xbf16>, vector<128x128xbf16>, vector<128x128xf32> -> vector<128x128xf32>
    %c0_26 = arith.constant 0 : index
    %c0_27 = arith.constant 0 : index
    %34 = vector.load %arg9[%c0_26, %c0_27] : memref<1x128xf32, #tpu.memory_space<vmem>>, vector<1x128xf32>
    %35 = vector.broadcast %34 : vector<1x128xf32> to vector<128x128xf32>
    %36 = arith.addf %33, %35 : vector<128x128xf32>
    %cst_28 = arith.constant 0.000000e+00 : f32
    %37 = vector.broadcast %cst_28 : f32 to vector<128x128xf32>
    %38 = arith.maximumf %36, %37 : vector<128x128xf32>
    %c0_29 = arith.constant 0 : index
    %c0_30 = arith.constant 0 : index
    %39 = vector.load %arg10[%c0_29, %c0_30] : memref<1x128xf32, #tpu.memory_space<vmem>>, vector<1x128xf32>
    %40 = vector.broadcast %39 : vector<1x128xf32> to vector<128x128xf32>
    %41 = arith.mulf %38, %40 : vector<128x128xf32>
    %cst_31 = arith.constant dense<0.000000e+00> : vector<128xf32>
    %42 = vector.multi_reduction <add>, %41, %cst_31 [1] : vector<128x128xf32> to vector<128xf32>
    %43 = vector.shape_cast %42 : vector<128xf32> to vector<128x1xf32>
    %c0_32 = arith.constant 0 : index
    %c0_33 = arith.constant 0 : index
    %44 = vector.load %arg11[%c0_32, %c0_33] : memref<1x1xf32, #tpu.memory_space<vmem>>, vector<1x1xf32>
    %45 = vector.broadcast %44 : vector<1x1xf32> to vector<128x1xf32>
    %46 = arith.addf %43, %45 : vector<128x1xf32>
    %47 = vector.shape_cast %46 : vector<128x1xf32> to vector<128x1xf32>
    %48 = vector.broadcast %47 : vector<128x1xf32> to vector<128x128xf32>
    %c0_34 = arith.constant 0 : index
    %c0_35 = arith.constant 0 : index
    %49 = vector.load %arg12[%c0_34, %c0_35] : memref<128x128xf32, #tpu.memory_space<vmem>>, vector<128x128xf32>
    tpu.vector_store %arg12[%c0_34, %c0_35], %48 {strides = array<i32>} : memref<128x128xf32, #tpu.memory_space<vmem>>, vector<128x128xf32>,
    return
  }
}

</mosaic_0001>

<bundles_post_ra>
// kernel: gcn_importance_gnn_forward.1
= control target key start
LH: loop header
LB: loop body
LE: loop exit
PB: predicated region body
PF: predicated region fallthrough
CT: control target
= control target key end

     0   :  { %s2234_s1 = inlined_call_operand.vmem [shape: bf16[128,128], index: 1, kind: input, shape index: {}]   ;;  %s2235_s0 = inlined_call_operand.vmem [shape: bf16[128,128], index: 0, kind: input, shape index: {}]   ;;  %s2236_s2 = inlined_call_operand.vmem [shape: bf16[128,128], index: 2, kind: input, shape index: {}]   ;;  %s2237_s4 = inlined_call_operand.vmem [shape: bf16[128,128], index: 4, kind: input, shape index: {}]   ;;  %s2238_s3 = inlined_call_operand.vmem [shape: f32[1,128], index: 3, kind: input, shape index: {}]   ;;  %s2239_s6 = inlined_call_operand.vmem [shape: bf16[128,128], index: 6, kind: input, shape index: {}]   ;;  %s2240_s5 = inlined_call_operand.vmem [shape: f32[1,128], index: 5, kind: input, shape index: {}]   ;;  %s2241_s8 = inlined_call_operand.vmem [shape: bf16[128,128], index: 8, kind: input, shape index: {}]   ;;  %s2242_s7 = inlined_call_operand.vmem [shape: f32[1,128], index: 7, kind: input, shape index: {}]   ;;  %s2243_s11 = inlined_call_operand.<no memory space> [shape: f32[1,1], index: 11, kind: input, shape index: {}]   ;;  %s2244_s9 = inlined_call_operand.vmem [shape: f32[1,128], index: 9, kind: input, shape index: {}]   ;;  %s2245_s10 = inlined_call_operand.vmem [shape: f32[1,128], index: 10, kind: input, shape index: {}]   ;;  %s2246_s12 = inlined_call_operand.vmem [shape: f32[128,128], index: 12, kind: output, shape index: {}]  }
   0x1   :  { %v1834_v0 = vld [vmem:[%s2234_s1 + $0x38] sm:$0xff]   ;;  %v1835_v1 = vld [vmem:[%s2234_s1 + $0x30] sm:$0xff]   ;;  %v1836_v2 = vld [vmem:[%s2234_s1 + $0x28] sm:$0xff]  }
   0x2   :  { %1591 = vmatprep.subr.bf16.mxu0 %v1834_v0  ;;  %v1837_v3 = vld [vmem:[%s2234_s1 + $0x20] sm:$0xff]   ;;  %v1838_v5 = vld [vmem:[%s2234_s1 + $0x18] sm:$0xff]   ;;  %v1839_v6 = vld [vmem:[%s2234_s1 + $0x10] sm:$0xff]  }
   0x3   :  { %1592 = vmatpush3.bf16.msra.mxu0 %v1834_v0  ;;  %v1963_v4 = vld [vmem:[%s2235_s0] sm:$0xff]   ;;  %v1850_v7 = vld [vmem:[%s2236_s2 + $0x38] sm:$0xff]   ;;  %v1851_v8 = vld [vmem:[%s2236_s2 + $0x30] sm:$0xff]  }
   0x4   :  { %1593 = vmatprep.subr.bf16.mxu0 %v1835_v1  ;;  %1607 = vmatprep.mubr.bf16.mxu0 %v1963_v4  ;;  %v1840_v9 = vld [vmem:[%s2234_s1 + $0x8] sm:$0xff]   ;;  %v1841_v11 = vld [vmem:[%s2234_s1] sm:$0xff]   ;;  %v1854_v13 = vld [vmem:[%s2236_s2 + $0x18] sm:$0xff]  }
   0x5   :  { %1623 = vmatprep.subr.bf16.mxu1 %v1850_v7  ;;  %v1852_v10 = vld [vmem:[%s2236_s2 + $0x28] sm:$0xff]   ;;  %v1853_v12 = vld [vmem:[%s2236_s2 + $0x20] sm:$0xff]   ;;  %v2001_v15 = vld [vmem:[%s2235_s0 + $0x10] sm:$0xff]  }
   0x6   :  { %1624 = vmatpush3.bf16.msra.mxu1 %v1850_v7  ;;  %v1996_v14 = vld [vmem:[%s2235_s0 + $0x8] sm:$0xff]   ;;  %v1855_v16 = vld [vmem:[%s2236_s2 + $0x10] sm:$0xff]   ;;  %v2011_v17 = vld [vmem:[%s2235_s0 + $0x18] sm:$0xff]  }
   0x7   :  { %1594 = vmatpush3.bf16.msra.mxu0 %v1835_v1  ;;  %1625 = vmatprep.subr.bf16.mxu1 %v1851_v8  ;;  %v2016_v18 = vld [vmem:[%s2235_s0 + $0x20] sm:$0xff]   ;;  %v2023_v19 = vld [vmem:[%s2235_s0 + $0x28] sm:$0xff]   ;;  %v2028_v20 = vld [vmem:[%s2235_s0 + $0x30] sm:$0xff]  }
   0x8   :  { %1595 = vmatprep.subr.bf16.mxu0 %v1836_v2  ;;  %v2035_v21 = vld [vmem:[%s2235_s0 + $0x38] sm:$0xff]   ;;  %v1856_v22 = vld [vmem:[%s2236_s2 + $0x8] sm:$0xff]   ;;  %v1857_v23 = vld [vmem:[%s2236_s2] sm:$0xff]  }
   0x9   :  { %v1858_v48 = vld [vmem:[%s2237_s4 + $0x38] sm:$0xff]   ;;  %v1859_v49 = vld [vmem:[%s2237_s4 + $0x30] sm:$0xff]   ;;  %v1860_v50 = vld [vmem:[%s2237_s4 + $0x28] sm:$0xff]  }
   0xa   :  { %1626 = vmatpush3.bf16.msra.mxu1 %v1851_v8  ;;  %v1861_v51 = vld [vmem:[%s2237_s4 + $0x20] sm:$0xff]   ;;  %v1862_v52 = vld [vmem:[%s2237_s4 + $0x18] sm:$0xff]   ;;  %v1863_v53 = vld [vmem:[%s2237_s4 + $0x10] sm:$0xff]  }
   0xb   :  { %1596 = vmatpush3.bf16.msra.mxu0 %v1836_v2  ;;  %1627 = vmatprep.subr.bf16.mxu1 %v1852_v10 }
   0xc   :  { %1597 = vmatprep.subr.bf16.mxu0 %v1837_v3 }
   0xe   :  { %1628 = vmatpush3.bf16.msra.mxu1 %v1852_v10 }
   0xf   :  { %1598 = vmatpush3.bf16.msra.mxu0 %v1837_v3  ;;  %1629 = vmatprep.subr.bf16.mxu1 %v1853_v12  ;;  %v1441_v3 = vld [vmem:[%s2238_s3] ss:$0 sm:$0xff] }
  0x10   :  { %1599 = vmatprep.subr.bf16.mxu0 %v1838_v5 }
  0x12   :  { %1630 = vmatpush3.bf16.msra.mxu1 %v1853_v12 }
  0x13   :  { %1600 = vmatpush3.bf16.msra.mxu0 %v1838_v5  ;;  %1631 = vmatprep.subr.bf16.mxu1 %v1854_v13 }
  0x14   :  { %1601 = vmatprep.subr.bf16.mxu0 %v1839_v6 }
  0x16   :  { %1632 = vmatpush3.bf16.msra.mxu1 %v1854_v13 }
  0x17   :  { %1602 = vmatpush3.bf16.msra.mxu0 %v1839_v6  ;;  %1633 = vmatprep.subr.bf16.mxu1 %v1855_v16 }
  0x18   :  { %1603 = vmatprep.subr.bf16.mxu0 %v1840_v9 }
  0x1a   :  { %1634 = vmatpush3.bf16.msra.mxu1 %v1855_v16 }
  0x1b   :  { %1604 = vmatpush3.bf16.msra.mxu0 %v1840_v9  ;;  %1635 = vmatprep.subr.bf16.mxu1 %v1856_v22 }
  0x1c   :  { %1605 = vmatprep.subr.bf16.mxu0 %v1841_v11 }
  0x1e   :  { %1636 = vmatpush3.bf16.msra.mxu1 %v1856_v22 }
  0x1f   :  { %1606 = vmatpush3.bf16.msra.mxu0 %v1841_v11  ;;  %1637 = vmatprep.subr.bf16.mxu1 %v1857_v23 }
  0x22   :  { %1608 = vmatmul.mubr.bf16.vlgmr.msra.gmra.mxu0 %v1996_v14  ;;  %1638 = vmatpush3.bf16.msra.mxu1 %v1857_v23 }
  0x23   :  { %1611 = vmatprep.mubr.bf16.mxu0 %v2001_v15  ;;  %1687 = vmatprep.subr.bf16.mxu1 %v1858_v48 }
  0x2a   :  { %1612 = vmatmul.mubr.bf16.gmra.mxu0 %v2011_v17 }
  0x2b   :  { %1615 = vmatprep.mubr.bf16.mxu0 %v2016_v18 }
  0x32   :  { %1616 = vmatmul.mubr.bf16.gmra.mxu0 %v2023_v19 }
  0x33   :  { %1619 = vmatprep.mubr.bf16.mxu0 %v2028_v20 }
  0x3a   :  { %1620 = vmatmul.mubr.bf16.gmra.mxu0 %v2035_v21 }
  0x3b   :  { %1671 = vmatprep.mubr.bf16.mxu0 %v1963_v4 }
  0xe2   :  { %v1609_v24 = vpop.f32.mrf.mxu0 }
  0xe4   :  { %v206_v25 = vpop.f32.mrf.mxu0 }
  0xe6   :  { %v1610_v26 = vpop.f32.mrf.mxu0 }
  0xe7   :  { %v270_v29 = vpack.c.bf16 %v1610_v26, %v1609_v24 }
  0xe8   :  { %v209_v27 = vpop.f32.mrf.mxu0 }
  0xe9   :  { %v269_v28 = vpack.c.bf16 %v209_v27, %v206_v25 }
  0xea   :  { %v1613_v30 = vpop.f32.mrf.mxu0 }
  0xeb   :  { %1639 = vmatprep.mubr.bf16.mxu1 %v269_v28 }
  0xec   :  { %v222_v31 = vpop.f32.mrf.mxu0  ;;  %1640 = vmatmul.mubr.bf16.vlgmr.msra.gmra.mxu1 %v270_v29 }
  0xed   :  { %1688 = vmatpush3.bf16.msra.mxu1 %v1858_v48 }
  0xee   :  { %v1614_v32 = vpop.f32.mrf.mxu0  ;;  %1689 = vmatprep.subr.bf16.mxu1 %v1859_v49 }
  0xef   :  { %v272_v35 = vpack.c.bf16 %v1614_v32, %v1613_v30 }
  0xf0   :  { %v225_v33 = vpop.f32.mrf.mxu0 }
  0xf1   :  { %v271_v34 = vpack.c.bf16 %v225_v33, %v222_v31  ;;  %1690 = vmatpush3.bf16.msra.mxu1 %v1859_v49 }
  0xf2   :  { %v1617_v36 = vpop.f32.mrf.mxu0  ;;  %1691 = vmatprep.subr.bf16.mxu1 %v1860_v50 }
  0xf3   :  { %1643 = vmatprep.mubr.bf16.mxu1 %v271_v34 }
  0xf4   :  { %v238_v37 = vpop.f32.mrf.mxu0  ;;  %1644 = vmatmul.mubr.bf16.gmra.mxu1 %v272_v35 }
  0xf5   :  { %1692 = vmatpush3.bf16.msra.mxu1 %v1860_v50 }
  0xf6   :  { %v1618_v38 = vpop.f32.mrf.mxu0  ;;  %1693 = vmatprep.subr.bf16.mxu1 %v1861_v51 }
  0xf7   :  { %v274_v41 = vpack.c.bf16 %v1618_v38, %v1617_v36 }
  0xf8   :  { %v241_v39 = vpop.f32.mrf.mxu0 }
  0xf9   :  { %v273_v40 = vpack.c.bf16 %v241_v39, %v238_v37  ;;  %1694 = vmatpush3.bf16.msra.mxu1 %v1861_v51 }
  0xfa   :  { %v1621_v42 = vpop.f32.mrf.mxu0  ;;  %1695 = vmatprep.subr.bf16.mxu1 %v1862_v52 }
  0xfb   :  { %1647 = vmatprep.mubr.bf16.mxu1 %v273_v40 }
  0xfc   :  { %v254_v43 = vpop.f32.mrf.mxu0  ;;  %1648 = vmatmul.mubr.bf16.gmra.mxu1 %v274_v41 }
  0xfd   :  { %1696 = vmatpush3.bf16.msra.mxu1 %v1862_v52 }
  0xfe   :  { %v1622_v44 = vpop.f32.mrf.mxu0  ;;  %1697 = vmatprep.subr.bf16.mxu1 %v1863_v53 }
  0xff   :  { %v276_v47 = vpack.c.bf16 %v1622_v44, %v1621_v42 }
 0x100   :  { %v257_v45 = vpop.f32.mrf.mxu0 }
 0x101   :  { %v275_v46 = vpack.c.bf16 %v257_v45, %v254_v43  ;;  %1698 = vmatpush3.bf16.msra.mxu1 %v1863_v53 }
 0x103   :  { %1651 = vmatprep.mubr.bf16.mxu1 %v275_v46 }
 0x104   :  { %1652 = vmatmul.mubr.bf16.gmra.mxu1 %v276_v47 }
 0x1ac   :  { %v1641_v54 = vpop.f32.mrf.mxu1 }
 0x1ad   :  { %v391_v44 = vadd.f32 %v1641_v54, %v1441_v3  ;;  %v1864_v54 = vld [vmem:[%s2237_s4 + $0x8] sm:$0xff]  }
 0x1ae   :  { %v382_v55 = vpop.f32.mrf.mxu1  ;;  %1699 = vmatprep.subr.bf16.mxu1 %v1864_v54 }
 0x1af   :  { %v447_v49 = vmax.f32 %v391_v44, 0.0  ;;  %v383_v50 = vadd.f32 %v1441_v3, %v382_v55  ;;  %1700 = vmatpush3.bf16.msra.mxu1 %v1864_v54  ;;  %v1865_v55 = vld [vmem:[%s2237_s4] sm:$0xff]  }
 0x1b0   :  { %v1642_v56 = vpop.f32.mrf.mxu1  ;;  %1701 = vmatprep.subr.bf16.mxu1 %v1865_v55 }
 0x1b1   :  { %v394_v41 = vadd.f32 %v1642_v56, %v1441_v3  ;;  %v445_v53 = vmax.f32 %v383_v50, 0.0 }
 0x1b2   :  { %v385_v57 = vpop.f32.mrf.mxu1 }
 0x1b3   :  { %v448_v46 = vmax.f32 %v394_v41, 0.0  ;;  %v386_v47 = vadd.f32 %v1441_v3, %v385_v57  ;;  %1702 = vmatpush3.bf16.msra.mxu1 %v1865_v55 }
 0x1b4   :  { %v1645_v58 = vpop.f32.mrf.mxu1 }
 0x1b5   :  { %v407_v34 = vadd.f32 %v1645_v58, %v1441_v3  ;;  %v462_v51 = vpack.c.bf16 %v448_v46, %v447_v49  ;;  %v446_v52 = vmax.f32 %v386_v47, 0.0 }
 0x1b6   :  { %v398_v59 = vpop.f32.mrf.mxu1 }
 0x1b7   :  { %v451_v39 = vmax.f32 %v407_v34, 0.0  ;;  %v399_v40 = vadd.f32 %v1441_v3, %v398_v59  ;;  %v461_v58 = vpack.c.bf16 %v446_v52, %v445_v53 }
 0x1b8   :  { %v1646_v60 = vpop.f32.mrf.mxu1 }
 0x1b9   :  { %v410_v31 = vadd.f32 %v1646_v60, %v1441_v3  ;;  %v449_v45 = vmax.f32 %v399_v40, 0.0 }
 0x1ba   :  { %v401_v61 = vpop.f32.mrf.mxu1 }
 0x1bb   :  { %v452_v36 = vmax.f32 %v410_v31, 0.0  ;;  %v402_v37 = vadd.f32 %v1441_v3, %v401_v61 }
 0x1bc   :  { %v1649_v62 = vpop.f32.mrf.mxu1 }
 0x1bd   :  { %v423_v22 = vadd.f32 %v1649_v62, %v1441_v3  ;;  %v464_v42 = vpack.c.bf16 %v452_v36, %v451_v39  ;;  %v450_v43 = vmax.f32 %v402_v37, 0.0 }
 0x1be   :  { %v414_v63 = vpop.f32.mrf.mxu1 }
 0x1bf   :  { %v455_v29 = vmax.f32 %v423_v22, 0.0  ;;  %v415_v30 = vadd.f32 %v1441_v3, %v414_v63  ;;  %v463_v48 = vpack.c.bf16 %v450_v43, %v449_v45  ;;  %v1450_v43 = vld [vmem:[%s2240_s5] ss:$0 sm:$0xff] }
 0x1c0   :  { %v1650_v0 = vpop.f32.mrf.mxu1 }
 0x1c1   :  { %v426_v11 = vadd.f32 %v1650_v0, %v1441_v3  ;;  %v453_v35 = vmax.f32 %v415_v30, 0.0 }
 0x1c2   :  { %v417_v1 = vpop.f32.mrf.mxu1 }
 0x1c3   :  { %v456_v26 = vmax.f32 %v426_v11, 0.0  ;;  %v418_v27 = vadd.f32 %v1441_v3, %v417_v1 }
 0x1c4   :  { %v1653_v2 = vpop.f32.mrf.mxu1 }
 0x1c5   :  { %v439_v6 = vadd.f32 %v1653_v2, %v1441_v3  ;;  %v466_v32 = vpack.c.bf16 %v456_v26, %v455_v29  ;;  %v454_v33 = vmax.f32 %v418_v27, 0.0  ;;  %v1868_v26 = vld [vmem:[%s2239_s6 + $0x28] sm:$0xff]   ;;  %v1869_v27 = vld [vmem:[%s2239_s6 + $0x20] sm:$0xff]   ;;  %v1871_v29 = vld [vmem:[%s2239_s6 + $0x10] sm:$0xff]  }
 0x1c6   :  { %v430_v5 = vpop.f32.mrf.mxu1 }
 0x1c7   :  { %v431_v8 = vadd.f32 %v1441_v3, %v430_v5  ;;  %v459_v12 = vmax.f32 %v439_v6, 0.0  ;;  %v465_v38 = vpack.c.bf16 %v454_v33, %v453_v35 }
 0x1c8   :  { %v1654_v7 = vpop.f32.mrf.mxu1 }
 0x1c9   :  { %v442_v9 = vadd.f32 %v1654_v7, %v1441_v3  ;;  %v457_v23 = vmax.f32 %v431_v8, 0.0 }
 0x1ca   :  { %v433_v10 = vpop.f32.mrf.mxu1 }
 0x1cb   :  { %v460_v13 = vmax.f32 %v442_v9, 0.0  ;;  %v434_v16 = vadd.f32 %v1441_v3, %v433_v10 }
 0x1cd   :  { %v468_v24 = vpack.c.bf16 %v460_v13, %v459_v12  ;;  %v458_v25 = vmax.f32 %v434_v16, 0.0 }
 0x1cf   :  { %v467_v28 = vpack.c.bf16 %v458_v25, %v457_v23  ;;  %1655 = vmatprep.subr.bf16.mxu0 %v468_v24  ;;  %v1867_v25 = vld [vmem:[%s2239_s6 + $0x30] sm:$0xff]  }
 0x1d0   :  { %1656 = vmatpush3.bf16.msra.mxu0 %v468_v24  ;;  %v1866_v24 = vld [vmem:[%s2239_s6 + $0x38] sm:$0xff]  }
 0x1d1   :  { %1657 = vmatprep.subr.bf16.mxu0 %v467_v28  ;;  %1751 = vmatprep.subr.bf16.mxu1 %v1866_v24 }
 0x1d4   :  { %1658 = vmatpush3.bf16.msra.mxu0 %v467_v28  ;;  %v1870_v28 = vld [vmem:[%s2239_s6 + $0x18] sm:$0xff]  }
 0x1d5   :  { %1659 = vmatprep.subr.bf16.mxu0 %v466_v32 }
 0x1d8   :  { %1660 = vmatpush3.bf16.msra.mxu0 %v466_v32 }
 0x1d9   :  { %1661 = vmatprep.subr.bf16.mxu0 %v465_v38 }
 0x1dc   :  { %1662 = vmatpush3.bf16.msra.mxu0 %v465_v38 }
 0x1dd   :  { %1663 = vmatprep.subr.bf16.mxu0 %v464_v42 }
 0x1e0   :  { %1664 = vmatpush3.bf16.msra.mxu0 %v464_v42 }
 0x1e1   :  { %1665 = vmatprep.subr.bf16.mxu0 %v463_v48 }
 0x1e4   :  { %1666 = vmatpush3.bf16.msra.mxu0 %v463_v48 }
 0x1e5   :  { %1667 = vmatprep.subr.bf16.mxu0 %v462_v51 }
 0x1e8   :  { %1668 = vmatpush3.bf16.msra.mxu0 %v462_v51 }
 0x1e9   :  { %1669 = vmatprep.subr.bf16.mxu0 %v461_v58 }
 0x1ec   :  { %1670 = vmatpush3.bf16.msra.mxu0 %v461_v58 }
 0x1ef   :  { %1672 = vmatmul.mubr.bf16.vlgmr.msra.gmra.mxu0 %v1996_v14 }
 0x1f0   :  { %1675 = vmatprep.mubr.bf16.mxu0 %v2001_v15 }
 0x1f7   :  { %1676 = vmatmul.mubr.bf16.gmra.mxu0 %v2011_v17 }
 0x1f8   :  { %1679 = vmatprep.mubr.bf16.mxu0 %v2016_v18 }
 0x1ff   :  { %1680 = vmatmul.mubr.bf16.gmra.mxu0 %v2023_v19 }
 0x200   :  { %1683 = vmatprep.mubr.bf16.mxu0 %v2028_v20 }
 0x207   :  { %1684 = vmatmul.mubr.bf16.gmra.mxu0 %v2035_v21 }
 0x208   :  { %1735 = vmatprep.mubr.bf16.mxu0 %v1963_v4 }
 0x2af   :  { %v1673_v56 = vpop.f32.mrf.mxu0 }
 0x2b1   :  { %v503_v57 = vpop.f32.mrf.mxu0 }
 0x2b3   :  { %v1674_v59 = vpop.f32.mrf.mxu0 }
 0x2b4   :  { %v567_v62 = vpack.c.bf16 %v1674_v59, %v1673_v56 }
 0x2b5   :  { %v506_v60 = vpop.f32.mrf.mxu0 }
 0x2b6   :  { %v566_v61 = vpack.c.bf16 %v506_v60, %v503_v57 }
 0x2b7   :  { %v1677_v63 = vpop.f32.mrf.mxu0 }
 0x2b8   :  { %1703 = vmatprep.mubr.bf16.mxu1 %v566_v61 }
 0x2b9   :  { %v519_v4 = vpop.f32.mrf.mxu0  ;;  %1704 = vmatmul.mubr.bf16.vlgmr.msra.gmra.mxu1 %v567_v62 }
 0x2ba   :  { %1752 = vmatpush3.bf16.msra.mxu1 %v1866_v24 }
 0x2bb   :  { %v1678_v0 = vpop.f32.mrf.mxu0  ;;  %1753 = vmatprep.subr.bf16.mxu1 %v1867_v25 }
 0x2bc   :  { %v569_v3 = vpack.c.bf16 %v1678_v0, %v1677_v63 }
 0x2bd   :  { %v522_v1 = vpop.f32.mrf.mxu0 }
 0x2be   :  { %v568_v2 = vpack.c.bf16 %v522_v1, %v519_v4  ;;  %1754 = vmatpush3.bf16.msra.mxu1 %v1867_v25 }
 0x2bf   :  { %v1681_v5 = vpop.f32.mrf.mxu0  ;;  %1755 = vmatprep.subr.bf16.mxu1 %v1868_v26 }
 0x2c0   :  { %1707 = vmatprep.mubr.bf16.mxu1 %v568_v2 }
 0x2c1   :  { %v535_v6 = vpop.f32.mrf.mxu0  ;;  %1708 = vmatmul.mubr.bf16.gmra.mxu1 %v569_v3 }
 0x2c2   :  { %1756 = vmatpush3.bf16.msra.mxu1 %v1868_v26 }
 0x2c3   :  { %v1682_v7 = vpop.f32.mrf.mxu0  ;;  %1757 = vmatprep.subr.bf16.mxu1 %v1869_v27 }
 0x2c4   :  { %v571_v10 = vpack.c.bf16 %v1682_v7, %v1681_v5 }
 0x2c5   :  { %v538_v8 = vpop.f32.mrf.mxu0 }
 0x2c6   :  { %v570_v9 = vpack.c.bf16 %v538_v8, %v535_v6  ;;  %1758 = vmatpush3.bf16.msra.mxu1 %v1869_v27 }
 0x2c7   :  { %v1685_v11 = vpop.f32.mrf.mxu0  ;;  %1759 = vmatprep.subr.bf16.mxu1 %v1870_v28 }
 0x2c8   :  { %1711 = vmatprep.mubr.bf16.mxu1 %v570_v9 }
 0x2c9   :  { %v551_v12 = vpop.f32.mrf.mxu0  ;;  %1712 = vmatmul.mubr.bf16.gmra.mxu1 %v571_v10 }
 0x2ca   :  { %1760 = vmatpush3.bf16.msra.mxu1 %v1870_v28 }
 0x2cb   :  { %v1686_v13 = vpop.f32.mrf.mxu0  ;;  %1761 = vmatprep.subr.bf16.mxu1 %v1871_v29 }
 0x2cc   :  { %v573_v23 = vpack.c.bf16 %v1686_v13, %v1685_v11 }
 0x2cd   :  { %v554_v16 = vpop.f32.mrf.mxu0 }
 0x2ce   :  { %v572_v22 = vpack.c.bf16 %v554_v16, %v551_v12  ;;  %1762 = vmatpush3.bf16.msra.mxu1 %v1871_v29 }
 0x2d0   :  { %1715 = vmatprep.mubr.bf16.mxu1 %v572_v22 }
 0x2d1   :  { %1716 = vmatmul.mubr.bf16.gmra.mxu1 %v573_v23 }
 0x379   :  { %v1705_v30 = vpop.f32.mrf.mxu1 }
 0x37a   :  { %v688_v12 = vadd.f32 %v1705_v30, %v1450_v43  ;;  %v1872_v30 = vld [vmem:[%s2239_s6 + $0x8] sm:$0xff]  }
 0x37b   :  { %v679_v31 = vpop.f32.mrf.mxu1  ;;  %1763 = vmatprep.subr.bf16.mxu1 %v1872_v30 }
 0x37c   :  { %v744_v24 = vmax.f32 %v688_v12, 0.0  ;;  %v680_v25 = vadd.f32 %v1450_v43, %v679_v31  ;;  %1764 = vmatpush3.bf16.msra.mxu1 %v1872_v30 }
 0x37d   :  { %v1706_v32 = vpop.f32.mrf.mxu1 }
 0x37e   :  { %v691_v9 = vadd.f32 %v1706_v32, %v1450_v43  ;;  %v742_v28 = vmax.f32 %v680_v25, 0.0 }
 0x37f   :  { %v682_v33 = vpop.f32.mrf.mxu1 }
 0x380   :  { %v745_v16 = vmax.f32 %v691_v9, 0.0  ;;  %v683_v22 = vadd.f32 %v1450_v43, %v682_v33 }
 0x381   :  { %v1709_v34 = vpop.f32.mrf.mxu1 }
 0x382   :  { %v704_v1 = vadd.f32 %v1709_v34, %v1450_v43  ;;  %v759_v26 = vpack.c.bf16 %v745_v16, %v744_v24  ;;  %v743_v27 = vmax.f32 %v683_v22, 0.0 }
 0x383   :  { %v695_v35 = vpop.f32.mrf.mxu1 }
 0x384   :  { %v748_v7 = vmax.f32 %v704_v1, 0.0  ;;  %v696_v8 = vadd.f32 %v1450_v43, %v695_v35  ;;  %v758_v29 = vpack.c.bf16 %v743_v27, %v742_v28 }
 0x385   :  { %v1710_v36 = vpop.f32.mrf.mxu1 }
 0x386   :  { %v707_v63 = vadd.f32 %v1710_v36, %v1450_v43  ;;  %v746_v13 = vmax.f32 %v696_v8, 0.0 }
 0x387   :  { %v698_v37 = vpop.f32.mrf.mxu1 }
 0x388   :  { %v749_v3 = vmax.f32 %v707_v63, 0.0  ;;  %v699_v5 = vadd.f32 %v1450_v43, %v698_v37 }
 0x389   :  { %v1713_v38 = vpop.f32.mrf.mxu1 }
 0x38a   :  { %v720_v58 = vadd.f32 %v1713_v38, %v1450_v43  ;;  %v761_v10 = vpack.c.bf16 %v749_v3, %v748_v7  ;;  %v747_v11 = vmax.f32 %v699_v5, 0.0 }
 0x38b   :  { %v711_v39 = vpop.f32.mrf.mxu1 }
 0x38c   :  { %v752_v61 = vmax.f32 %v720_v58, 0.0  ;;  %v712_v62 = vadd.f32 %v1450_v43, %v711_v39  ;;  %v760_v23 = vpack.c.bf16 %v747_v11, %v746_v13  ;;  %v1879_v58 = vld [vmem:[%s2241_s8 + $0x10] sm:$0xff]  }
 0x38d   :  { %v1714_v40 = vpop.f32.mrf.mxu1 }
 0x38e   :  { %v723_v50 = vadd.f32 %v1714_v40, %v1450_v43  ;;  %v750_v2 = vmax.f32 %v712_v62, 0.0 }
 0x38f   :  { %v714_v41 = vpop.f32.mrf.mxu1 }
 0x390   :  { %v753_v57 = vmax.f32 %v723_v50, 0.0  ;;  %v715_v59 = vadd.f32 %v1450_v43, %v714_v41 }
 0x391   :  { %v1717_v42 = vpop.f32.mrf.mxu1 }
 0x392   :  { %v736_v45 = vadd.f32 %v1717_v42, %v1450_v43  ;;  %v763_v4 = vpack.c.bf16 %v753_v57, %v752_v61  ;;  %v751_v0 = vmax.f32 %v715_v59, 0.0  ;;  %v1459_v59 = vld [vmem:[%s2242_s7] ss:$0 sm:$0xff] }
 0x393   :  { %v727_v44 = vpop.f32.mrf.mxu1 }
 0x394   :  { %v728_v47 = vadd.f32 %v1450_v43, %v727_v44  ;;  %v756_v51 = vmax.f32 %v736_v45, 0.0  ;;  %v762_v6 = vpack.c.bf16 %v751_v0, %v750_v2 }
 0x395   :  { %v1718_v46 = vpop.f32.mrf.mxu1 }
 0x396   :  { %v739_v48 = vadd.f32 %v1718_v46, %v1450_v43  ;;  %v754_v54 = vmax.f32 %v728_v47, 0.0 }
 0x397   :  { %v730_v49 = vpop.f32.mrf.mxu1 }
 0x398   :  { %v757_v52 = vmax.f32 %v739_v48, 0.0  ;;  %v731_v53 = vadd.f32 %v1450_v43, %v730_v49 }
 0x39a   :  { %v765_v55 = vpack.c.bf16 %v757_v52, %v756_v51  ;;  %v755_v56 = vmax.f32 %v731_v53, 0.0 }
 0x39c   :  { %v764_v60 = vpack.c.bf16 %v755_v56, %v754_v54  ;;  %1719 = vmatprep.subr.bf16.mxu0 %v765_v55  ;;  %v1880_v54 = vld [vmem:[%s2241_s8 + $0x8] sm:$0xff]  }
 0x39d   :  { %1720 = vmatpush3.bf16.msra.mxu0 %v765_v55  ;;  %v1881_v55 = vld [vmem:[%s2241_s8] sm:$0xff]  }
 0x39e   :  { %1721 = vmatprep.subr.bf16.mxu0 %v764_v60 }
 0x3a1   :  { %1722 = vmatpush3.bf16.msra.mxu0 %v764_v60 }
 0x3a2   :  { %1723 = vmatprep.subr.bf16.mxu0 %v763_v4 }
 0x3a5   :  { %1724 = vmatpush3.bf16.msra.mxu0 %v763_v4 }
 0x3a6   :  { %1725 = vmatprep.subr.bf16.mxu0 %v762_v6 }
 0x3a9   :  { %1726 = vmatpush3.bf16.msra.mxu0 %v762_v6 }
 0x3aa   :  { %1727 = vmatprep.subr.bf16.mxu0 %v761_v10 }
 0x3ad   :  { %1728 = vmatpush3.bf16.msra.mxu0 %v761_v10 }
 0x3ae   :  { %1729 = vmatprep.subr.bf16.mxu0 %v760_v23 }
 0x3b1   :  { %1730 = vmatpush3.bf16.msra.mxu0 %v760_v23 }
 0x3b2   :  { %1731 = vmatprep.subr.bf16.mxu0 %v759_v26 }
 0x3b5   :  { %1732 = vmatpush3.bf16.msra.mxu0 %v759_v26 }
 0x3b6   :  { %1733 = vmatprep.subr.bf16.mxu0 %v758_v29 }
 0x3b9   :  { %1734 = vmatpush3.bf16.msra.mxu0 %v758_v29 }
 0x3bc   :  { %1736 = vmatmul.mubr.bf16.vlgmr.msra.gmra.mxu0 %v1996_v14  ;;  %v1873_v14 = vld [vmem:[%s2239_s6] sm:$0xff]  }
 0x3bd   :  { %1739 = vmatprep.mubr.bf16.mxu0 %v2001_v15  ;;  %1765 = vmatprep.subr.bf16.mxu1 %v1873_v14  ;;  %v1874_v15 = vld [vmem:[%s2241_s8 + $0x38] sm:$0xff]  }
 0x3be   :  { %1766 = vmatpush3.bf16.msra.mxu1 %v1873_v14  ;;  %1783 = vmatprep.subr.bf16.mxu0 %v1874_v15 }
 0x3bf   :  { %1815 = vmatprep.subr.bf16.mxu1 %v1874_v15  ;;  %1784 = vmatpush3.bf16.msra.mxu0 %v1874_v15 }
 0x3c4   :  { %1740 = vmatmul.mubr.bf16.gmra.mxu0 %v2011_v17  ;;  %v1875_v17 = vld [vmem:[%s2241_s8 + $0x30] sm:$0xff]  }
 0x3c5   :  { %1743 = vmatprep.mubr.bf16.mxu0 %v2016_v18  ;;  %1785 = vmatprep.subr.bf16.mxu0 %v1875_v17  ;;  %v1876_v18 = vld [vmem:[%s2241_s8 + $0x28] sm:$0xff]  }
 0x3c6   :  { %1786 = vmatpush3.bf16.msra.mxu0 %v1875_v17 }
 0x3c7   :  { %1787 = vmatprep.subr.bf16.mxu0 %v1876_v18 }
 0x3ca   :  { %1788 = vmatpush3.bf16.msra.mxu0 %v1876_v18 }
 0x3cc   :  { %1744 = vmatmul.mubr.bf16.gmra.mxu0 %v2023_v19  ;;  %v1877_v19 = vld [vmem:[%s2241_s8 + $0x20] sm:$0xff]  }
 0x3cd   :  { %1747 = vmatprep.mubr.bf16.mxu0 %v2028_v20  ;;  %1789 = vmatprep.subr.bf16.mxu0 %v1877_v19  ;;  %v1878_v20 = vld [vmem:[%s2241_s8 + $0x18] sm:$0xff]  }
 0x3ce   :  { %1790 = vmatpush3.bf16.msra.mxu0 %v1877_v19 }
 0x3cf   :  { %1791 = vmatprep.subr.bf16.mxu0 %v1878_v20 }
 0x3d2   :  { %1792 = vmatpush3.bf16.msra.mxu0 %v1878_v20 }
 0x3d3   :  { %1793 = vmatprep.subr.bf16.mxu0 %v1879_v58 }
 0x3d4   :  { %1748 = vmatmul.mubr.bf16.gmra.mxu0 %v2035_v21 }
 0x3d6   :  { %1794 = vmatpush3.bf16.msra.mxu0 %v1879_v58 }
 0x3d7   :  { %1795 = vmatprep.subr.bf16.mxu0 %v1880_v54 }
 0x3da   :  { %1796 = vmatpush3.bf16.msra.mxu0 %v1880_v54 }
 0x3db   :  { %1797 = vmatprep.subr.bf16.mxu0 %v1881_v55 }
 0x3de   :  { %1798 = vmatpush3.bf16.msra.mxu0 %v1881_v55 }
 0x47c   :  { %v1737_v21 = vpop.f32.mrf.mxu0 }
 0x47e   :  { %v800_v31 = vpop.f32.mrf.mxu0 }
 0x480   :  { %v1738_v32 = vpop.f32.mrf.mxu0 }
 0x481   :  { %v864_v35 = vpack.c.bf16 %v1738_v32, %v1737_v21 }
 0x482   :  { %v803_v33 = vpop.f32.mrf.mxu0 }
 0x483   :  { %v863_v34 = vpack.c.bf16 %v803_v33, %v800_v31 }
 0x484   :  { %v1741_v36 = vpop.f32.mrf.mxu0 }
 0x485   :  { %1767 = vmatprep.mubr.bf16.mxu1 %v863_v34 }
 0x486   :  { %v816_v37 = vpop.f32.mrf.mxu0  ;;  %1768 = vmatmul.mubr.bf16.vlgmr.msra.gmra.mxu1 %v864_v35 }
 0x487   :  { %1823 = vmatpush3.bf16.msra.mxu1 %v1874_v15 }
 0x488   :  { %v1742_v38 = vpop.f32.mrf.mxu0  ;;  %1816 = vmatprep.subr.bf16.mxu1 %v1875_v17 }
 0x489   :  { %v866_v41 = vpack.c.bf16 %v1742_v38, %v1741_v36 }
 0x48a   :  { %v819_v39 = vpop.f32.mrf.mxu0 }
 0x48b   :  { %v865_v40 = vpack.c.bf16 %v819_v39, %v816_v37  ;;  %1824 = vmatpush3.bf16.msra.mxu1 %v1875_v17 }
 0x48c   :  { %v1745_v42 = vpop.f32.mrf.mxu0  ;;  %1817 = vmatprep.subr.bf16.mxu1 %v1876_v18 }
 0x48d   :  { %1771 = vmatprep.mubr.bf16.mxu1 %v865_v40 }
 0x48e   :  { %v832_v43 = vpop.f32.mrf.mxu0  ;;  %1772 = vmatmul.mubr.bf16.gmra.mxu1 %v866_v41 }
 0x48f   :  { %1825 = vmatpush3.bf16.msra.mxu1 %v1876_v18 }
 0x490   :  { %v1746_v44 = vpop.f32.mrf.mxu0  ;;  %1818 = vmatprep.subr.bf16.mxu1 %v1877_v19 }
 0x491   :  { %v868_v47 = vpack.c.bf16 %v1746_v44, %v1745_v42 }
 0x492   :  { %v835_v45 = vpop.f32.mrf.mxu0 }
 0x493   :  { %v867_v46 = vpack.c.bf16 %v835_v45, %v832_v43  ;;  %1826 = vmatpush3.bf16.msra.mxu1 %v1877_v19 }
 0x494   :  { %v1749_v48 = vpop.f32.mrf.mxu0  ;;  %1819 = vmatprep.subr.bf16.mxu1 %v1878_v20 }
 0x495   :  { %1775 = vmatprep.mubr.bf16.mxu1 %v867_v46 }
 0x496   :  { %v848_v49 = vpop.f32.mrf.mxu0  ;;  %1776 = vmatmul.mubr.bf16.gmra.mxu1 %v868_v47 }
 0x497   :  { %1827 = vmatpush3.bf16.msra.mxu1 %v1878_v20 }
 0x498   :  { %v1750_v50 = vpop.f32.mrf.mxu0  ;;  %1820 = vmatprep.subr.bf16.mxu1 %v1879_v58 }
 0x499   :  { %v870_v53 = vpack.c.bf16 %v1750_v50, %v1749_v48  ;;  %v17_v50 = vstv %s2243_s11 }
 0x49a   :  { %v851_v51 = vpop.f32.mrf.mxu0  ;;  %18 = vst [vmem:[#allocation2] sm:$0x1] %v17_v50 }
 0x49b   :  { %v869_v52 = vpack.c.bf16 %v851_v51, %v848_v49  ;;  %1828 = vmatpush3.bf16.msra.mxu1 %v1879_v58  ;;  %v2147_v51 = vld [vmem:[%s2244_s9] ss:$0 sm:$0xff] }
 0x49c   :  { %1821 = vmatprep.subr.bf16.mxu1 %v1880_v54 }
 0x49d   :  { %1779 = vmatprep.mubr.bf16.mxu1 %v869_v52 }
 0x49e   :  { %1780 = vmatmul.mubr.bf16.gmra.mxu1 %v870_v53 }
 0x49f   :  { %1829 = vmatpush3.bf16.msra.mxu1 %v1880_v54  ;;  %v2153_v54 = vld [vmem:[%s2245_s10] ss:$0 sm:$0xff] }
 0x4a0   :  { %1822 = vmatprep.subr.bf16.mxu1 %v1881_v55 }
 0x4a3   :  { %1830 = vmatpush3.bf16.msra.mxu1 %v1881_v55 }
 0x546   :  { %v1769_v56 = vpop.f32.mrf.mxu1 }
 0x547   :  { %v985_v63 = vadd.f32 %v1769_v56, %v1459_v59 }
 0x548   :  { %v976_v57 = vpop.f32.mrf.mxu1 }
 0x549   :  { %v977_v61 = vadd.f32 %v1459_v59, %v976_v57  ;;  %v1041_v6 = vmax.f32 %v985_v63, 0.0 }
 0x54a   :  { %v1770_v60 = vpop.f32.mrf.mxu1 }
 0x54b   :  { %v988_v62 = vadd.f32 %v1770_v60, %v1459_v59  ;;  %v1039_v3 = vmax.f32 %v977_v61, 0.0 }
 0x54c   :  { %v979_v4 = vpop.f32.mrf.mxu1 }
 0x54d   :  { %v980_v0 = vadd.f32 %v1459_v59, %v979_v4  ;;  %v1042_v1 = vmax.f32 %v988_v62, 0.0 }
 0x54e   :  { %v1773_v2 = vpop.f32.mrf.mxu1 }
 0x54f   :  { %v1040_v5 = vmax.f32 %v980_v0, 0.0  ;;  %v1056_v9 = vpack.c.bf16 %v1042_v1, %v1041_v6  ;;  %v1001_v13 = vadd.f32 %v1773_v2, %v1459_v59 }
 0x550   :  { %v992_v7 = vpop.f32.mrf.mxu1 }
 0x551   :  { %v1055_v8 = vpack.c.bf16 %v1040_v5, %v1039_v3  ;;  %v993_v11 = vadd.f32 %v1459_v59, %v992_v7  ;;  %v1045_v27 = vmax.f32 %v1001_v13, 0.0 }
 0x552   :  { %v1774_v10 = vpop.f32.mrf.mxu1 }
 0x553   :  { %v1004_v12 = vadd.f32 %v1774_v10, %v1459_v59  ;;  %1799 = vmatprep.mubr.bf16.mxu0 %v1055_v8  ;;  %v1043_v25 = vmax.f32 %v993_v11, 0.0 }
 0x554   :  { %v995_v16 = vpop.f32.mrf.mxu1  ;;  %1800 = vmatmul.mubr.bf16.vlgmr.msra.gmra.mxu0 %v1056_v9 }
 0x555   :  { %v996_v22 = vadd.f32 %v1459_v59, %v995_v16  ;;  %v1046_v23 = vmax.f32 %v1004_v12, 0.0 }
 0x556   :  { %v1777_v24 = vpop.f32.mrf.mxu1 }
 0x557   :  { %v1044_v26 = vmax.f32 %v996_v22, 0.0  ;;  %v1058_v30 = vpack.c.bf16 %v1046_v23, %v1045_v27  ;;  %v1017_v18 = vadd.f32 %v1777_v24, %v1459_v59 }
 0x558   :  { %v1008_v28 = vpop.f32.mrf.mxu1 }
 0x559   :  { %v1057_v29 = vpack.c.bf16 %v1044_v26, %v1043_v25  ;;  %v1009_v15 = vadd.f32 %v1459_v59, %v1008_v28  ;;  %v1049_v34 = vmax.f32 %v1017_v18, 0.0 }
 0x55a   :  { %v1778_v14 = vpop.f32.mrf.mxu1 }
 0x55b   :  { %v1020_v17 = vadd.f32 %v1778_v14, %v1459_v59  ;;  %1803 = vmatprep.mubr.bf16.mxu0 %v1057_v29  ;;  %v1047_v32 = vmax.f32 %v1009_v15, 0.0  ;;  %v1882_v29 = vmov 0  }
 0x55c   :  { %v1011_v19 = vpop.f32.mrf.mxu1  ;;  %1804 = vmatmul.mubr.bf16.gmra.mxu0 %v1058_v30  ;;  %1832 = vset.pattern.permute.xlu1 %v1882_v29 }
 0x55d   :  { %v1012_v20 = vadd.f32 %v1459_v59, %v1011_v19  ;;  %v1050_v21 = vmax.f32 %v1020_v17, 0.0  ;;  %1833 = vset.pattern.permute.xlu0 %v1882_v29 }
 0x55e   :  { %v1781_v31 = vpop.f32.mrf.mxu1 }
 0x55f   :  { %v1048_v33 = vmax.f32 %v1012_v20, 0.0  ;;  %v1060_v37 = vpack.c.bf16 %v1050_v21, %v1049_v34  ;;  %v1033_v41 = vadd.f32 %v1781_v31, %v1459_v59 }
 0x560   :  { %v1024_v35 = vpop.f32.mrf.mxu1 }
 0x561   :  { %v1059_v36 = vpack.c.bf16 %v1048_v33, %v1047_v32  ;;  %v1025_v39 = vadd.f32 %v1459_v59, %v1024_v35  ;;  %v1053_v47 = vmax.f32 %v1033_v41, 0.0 }
 0x562   :  { %v1782_v38 = vpop.f32.mrf.mxu1 }
 0x563   :  { %v1036_v40 = vadd.f32 %v1782_v38, %v1459_v59  ;;  %1807 = vmatprep.mubr.bf16.mxu1 %v1059_v36  ;;  %v1051_v45 = vmax.f32 %v1025_v39, 0.0 }
 0x564   :  { %v1027_v42 = vpop.f32.mrf.mxu1  ;;  %1808 = vmatmul.mubr.bf16.vlgmr.msra.gmra.mxu1 %v1060_v37 }
 0x565   :  { %v1028_v43 = vadd.f32 %v1459_v59, %v1027_v42  ;;  %v1054_v44 = vmax.f32 %v1036_v40, 0.0 }
 0x567   :  { %v1052_v46 = vmax.f32 %v1028_v43, 0.0  ;;  %v1062_v49 = vpack.c.bf16 %v1054_v44, %v1053_v47 }
 0x569   :  { %v1061_v48 = vpack.c.bf16 %v1052_v46, %v1051_v45 }
 0x56b   :  { %1811 = vmatprep.mubr.bf16.mxu1 %v1061_v48 }
 0x56c   :  { %1812 = vmatmul.mubr.bf16.gmra.mxu1 %v1062_v49 }
 0x614   :  { %v1801_v52 = vpop.f32.mrf.mxu0 }
 0x615   :  { %v1177_v53 = vadd.f32 %v1801_v52, %v2147_v51 }
 0x616   :  { %v1168_v58 = vpop.f32.mrf.mxu0 }
 0x617   :  { %v1233_v55 = vmax.f32 %v1177_v53, 0.0  ;;  %v1169_v56 = vadd.f32 %v2147_v51, %v1168_v58 }
 0x618   :  { %v1802_v57 = vpop.f32.mrf.mxu0 }
 0x619   :  { %v1231_v59 = vmax.f32 %v1169_v56, 0.0  ;;  %v1180_v60 = vadd.f32 %v1802_v57, %v2147_v51  ;;  %v1256_v61 = vmul.f32 %v2153_v54, %v1233_v55  ;;  %v1478_v55 = vld [vmem:[#allocation2] ss:$0 sm:$0xff] }
 0x61a   :  { %v1171_v62 = vpop.f32.mrf.mxu0 }
 0x61b   :  { %v1234_v63 = vmax.f32 %v1180_v60, 0.0  ;;  %v1172_v4 = vadd.f32 %v2147_v51, %v1171_v62  ;;  %1274 = vadd.xlane.f32.xlu1 %v1256_v61  ;;  %v1254_v0 = vmul.f32 %v2153_v54, %v1231_v59 }
 0x61c   :  { %v1805_v1 = vpop.f32.mrf.mxu0 }
 0x61d   :  { %v1232_v2 = vmax.f32 %v1172_v4, 0.0  ;;  %v1193_v3 = vadd.f32 %v1805_v1, %v2147_v51  ;;  %1270 = vadd.xlane.f32.xlu0 %v1254_v0  ;;  %v1257_v5 = vmul.f32 %v2153_v54, %v1234_v63 }
 0x61e   :  { %v1184_v6 = vpop.f32.mrf.mxu0 }
 0x61f   :  { %v1237_v7 = vmax.f32 %v1193_v3, 0.0  ;;  %v1185_v8 = vadd.f32 %v2147_v51, %v1184_v6  ;;  %1276 = vadd.xlane.f32.xlu1 %v1257_v5  ;;  %v1255_v9 = vmul.f32 %v2153_v54, %v1232_v2 }
 0x620   :  { %v1806_v10 = vpop.f32.mrf.mxu0 }
 0x621   :  { %v1196_v11 = vadd.f32 %v1806_v10, %v2147_v51  ;;  %1272 = vadd.xlane.f32.xlu0 %v1255_v9  ;;  %v1235_v13 = vmax.f32 %v1185_v8, 0.0  ;;  %v1260_v23 = vmul.f32 %v2153_v54, %v1237_v7 }
 0x622   :  { %v1187_v12 = vpop.f32.mrf.mxu0 }
 0x623   :  { %v1238_v16 = vmax.f32 %v1196_v11, 0.0  ;;  %v1188_v22 = vadd.f32 %v2147_v51, %v1187_v12  ;;  %v1258_v15 = vmul.f32 %v2153_v54, %v1235_v13 }
 0x624   :  { %v1809_v24 = vpop.f32.mrf.mxu1 }
 0x625   :  { %v1236_v25 = vmax.f32 %v1188_v22, 0.0  ;;  %v1209_v26 = vadd.f32 %v1809_v24, %v2147_v51  ;;  %1282 = vadd.xlane.f32.xlu0 %v1260_v23  ;;  %v1261_v27 = vmul.f32 %v2153_v54, %v1238_v16 }
 0x626   :  { %v1200_v28 = vpop.f32.mrf.mxu1 }
 0x627   :  { %v1241_v30 = vmax.f32 %v1209_v26, 0.0  ;;  %v1201_v14 = vadd.f32 %v2147_v51, %v1200_v28  ;;  %1284 = vadd.xlane.f32.xlu1 %v1261_v27  ;;  %v1259_v19 = vmul.f32 %v2153_v54, %v1236_v25 }
 0x628   :  { %v1810_v17 = vpop.f32.mrf.mxu1 }
 0x629   :  { %v1212_v18 = vadd.f32 %v1810_v17, %v2147_v51  ;;  %1278 = vadd.xlane.f32.xlu0 %v1258_v15  ;;  %v1239_v21 = vmax.f32 %v1201_v14, 0.0  ;;  %v1264_v33 = vmul.f32 %v2153_v54, %v1241_v30 }
 0x62a   :  { %v1203_v20 = vpop.f32.mrf.mxu1 }
 0x62b   :  { %v1242_v31 = vmax.f32 %v1212_v18, 0.0  ;;  %v1204_v32 = vadd.f32 %v2147_v51, %v1203_v20  ;;  %1280 = vadd.xlane.f32.xlu1 %v1259_v19  ;;  %v1262_v40 = vmul.f32 %v2153_v54, %v1239_v21 }
 0x62c   :  { %v1813_v34 = vpop.f32.mrf.mxu1 }
 0x62d   :  { %v1240_v35 = vmax.f32 %v1204_v32, 0.0  ;;  %1290 = vadd.xlane.f32.xlu0 %v1264_v33  ;;  %v1265_v36 = vmul.f32 %v2153_v54, %v1242_v31  ;;  %v1225_v38 = vadd.f32 %v1813_v34, %v2147_v51 }
 0x62e   :  { %v1216_v37 = vpop.f32.mrf.mxu1 }
 0x62f   :  { %v1217_v39 = vadd.f32 %v2147_v51, %v1216_v37  ;;  %1292 = vadd.xlane.f32.xlu1 %v1265_v36  ;;  %v1263_v44 = vmul.f32 %v2153_v54, %v1240_v35  ;;  %v1245_v46 = vmax.f32 %v1225_v38, 0.0 }
 0x630   :  { %v1814_v41 = vpop.f32.mrf.mxu1 }
 0x631   :  { %v1243_v42 = vmax.f32 %v1217_v39, 0.0  ;;  %v1228_v43 = vadd.f32 %v1814_v41, %v2147_v51  ;;  %1286 = vadd.xlane.f32.xlu0 %v1262_v40  ;;  %v1268_v53 = vmul.f32 %v2153_v54, %v1245_v46 }
 0x632   :  { %v1219_v45 = vpop.f32.mrf.mxu1 }
 0x633   :  { %v1246_v47 = vmax.f32 %v1228_v43, 0.0  ;;  %v1220_v48 = vadd.f32 %v2147_v51, %v1219_v45  ;;  %1288 = vadd.xlane.f32.xlu1 %v1263_v44  ;;  %v1266_v49 = vmul.f32 %v2153_v54, %v1243_v42 }
 0x635   :  { %v1244_v50 = vmax.f32 %v1220_v48, 0.0  ;;  %1294 = vadd.xlane.f32.xlu0 %v1266_v49  ;;  %v1269_v52 = vmul.f32 %v2153_v54, %v1246_v47 }
 0x637   :  { %1300 = vadd.xlane.f32.xlu1 %v1269_v52  ;;  %v1267_v58 = vmul.f32 %v2153_v54, %v1244_v50 }
 0x639   :  { %1298 = vadd.xlane.f32.xlu0 %v1268_v53 }
 0x63b   :  { %1296 = vadd.xlane.f32.xlu1 %v1267_v58 }
 0x6a4   :  { %v1275_v56 = vpop.xlane.xlu1 %1274 }
 0x6a5   :  { %v1311_v57 = vadd.f32 %v1478_v55, %v1275_v56 }
 0x6a6   :  { %v1271_v59 = vpop.xlane.xlu0 %1270 }
 0x6a7   :  { %v1309_v60 = vadd.f32 %v1478_v55, %v1271_v59  ;;  %1337 = vperm.xlu1 %1832, %v1311_v57  }
 0x6a8   :  { %v1277_v51 = vpop.xlane.xlu1 %1276 }
 0x6a9   :  { %v1312_v61 = vadd.f32 %v1478_v55, %v1277_v51  ;;  %1327 = vperm.xlu0 %1833, %v1309_v60  }
 0x6aa   :  { %v1273_v62 = vpop.xlane.xlu0 %1272 }
 0x6ab   :  { %1342 = vperm.xlu1 %1832, %v1312_v61   ;;  %v1310_v63 = vadd.f32 %v1478_v55, %v1273_v62 }
 0x6ae   :  { %v1283_v4 = vpop.xlane.xlu0 %1282 }
 0x6af   :  { %1332 = vperm.xlu1 %1832, %v1310_v63   ;;  %v1315_v1 = vadd.f32 %v1478_v55, %v1283_v4 }
 0x6b0   :  { %v1285_v0 = vpop.xlane.xlu1 %1284 }
 0x6b1   :  { %v1316_v7 = vadd.f32 %v1478_v55, %v1285_v0 }
 0x6b2   :  { %v1279_v2 = vpop.xlane.xlu0 %1278 }
 0x6b3   :  { %1357 = vperm.xlu1 %1832, %v1315_v1   ;;  %v1313_v3 = vadd.f32 %v1478_v55, %v1279_v2 }
 0x6b4   :  { %v1281_v54 = vpop.xlane.xlu1 %1280 }
 0x6b5   :  { %v1314_v10 = vadd.f32 %v1478_v55, %v1281_v54 }
 0x6b6   :  { %v1291_v5 = vpop.xlane.xlu0 %1290 }
 0x6b7   :  { %1347 = vperm.xlu1 %1832, %v1313_v3   ;;  %v1319_v16 = vadd.f32 %v1478_v55, %v1291_v5 }
 0x6b8   :  { %v1293_v6 = vpop.xlane.xlu1 %1292 }
 0x6b9   :  { %v1320_v8 = vadd.f32 %v1478_v55, %v1293_v6 }
 0x6ba   :  { %v1287_v12 = vpop.xlane.xlu0 %1286 }
 0x6bb   :  { %1362 = vperm.xlu1 %1832, %v1316_v7   ;;  %1382 = vperm.xlu0 %1833, %v1320_v8   ;;  %v1317_v24 = vadd.f32 %v1478_v55, %v1287_v12 }
 0x6bc   :  { %v1289_v9 = vpop.xlane.xlu1 %1288 }
 0x6bd   :  { %v1318_v11 = vadd.f32 %v1478_v55, %v1289_v9 }
 0x6be   :  { %v1295_v22 = vpop.xlane.xlu0 %1294 }
 0x6bf   :  { %1352 = vperm.xlu1 %1832, %v1314_v10   ;;  %1372 = vperm.xlu0 %1833, %v1318_v11   ;;  %v1321_v26 = vadd.f32 %v1478_v55, %v1295_v22 }
 0x6c0   :  { %v1301_v13 = vpop.xlane.xlu1 %1300 }
 0x6c1   :  { %v1324_v27 = vadd.f32 %v1478_v55, %v1301_v13 }
 0x6c2   :  { %v1299_v28 = vpop.xlane.xlu0 %1298 }
 0x6c3   :  { %1377 = vperm.xlu1 %1832, %v1319_v16   ;;  %v1323_v29 = vadd.f32 %v1478_v55, %v1299_v28 }
 0x6c4   :  { %v1297_v23 = vpop.xlane.xlu1 %1296 }
 0x6c5   :  { %v1322_v25 = vadd.f32 %v1478_v55, %v1297_v23 }
 0x6c7   :  { %1367 = vperm.xlu1 %1832, %v1317_v24   ;;  %1392 = vperm.xlu0 %1833, %v1322_v25  }
 0x6cb   :  { %1402 = vperm.xlu0 %1833, %v1324_v27   ;;  %1387 = vperm.xlu1 %1832, %v1321_v26  }
 0x6cf   :  { %1397 = vperm.xlu1 %1832, %v1323_v29  }
 0x722   :  { %v1338_v30 = vpop.permute.xlu1 %1337 }
 0x723   :  { %1407 = vst [vmem:[%s2246_s12 + $0x10] sm:$0xff] %v1338_v30 }
 0x724   :  { %v1328_v14 = vpop.permute.xlu0 %1327 }
 0x725   :  { %1405 = vst [vmem:[%s2246_s12] sm:$0xff] %v1328_v14 }
 0x726   :  { %v1343_v15 = vpop.permute.xlu1 %1342 }
 0x727   :  { %1408 = vst [vmem:[%s2246_s12 + $0x18] sm:$0xff] %v1343_v15 }
 0x72a   :  { %v1333_v17 = vpop.permute.xlu1 %1332 }
 0x72b   :  { %1406 = vst [vmem:[%s2246_s12 + $0x8] sm:$0xff] %v1333_v17 }
 0x72e   :  { %v1358_v18 = vpop.permute.xlu1 %1357 }
 0x72f   :  { %1411 = vst [vmem:[%s2246_s12 + $0x30] sm:$0xff] %v1358_v18 }
 0x732   :  { %v1348_v19 = vpop.permute.xlu1 %1347 }
 0x733   :  { %1409 = vst [vmem:[%s2246_s12 + $0x20] sm:$0xff] %v1348_v19 }
 0x736   :  { %v1363_v20 = vpop.permute.xlu1 %1362  ;;  %v1383_v21 = vpop.permute.xlu0 %1382 }
 0x737   :  { %1412 = vst [vmem:[%s2246_s12 + $0x38] sm:$0xff] %v1363_v20  ;;  %1416 = vst [vmem:[%s2246_s12 + $0x58] sm:$0xff] %v1383_v21 }
 0x73a   :  { %v1353_v31 = vpop.permute.xlu1 %1352  ;;  %v1373_v32 = vpop.permute.xlu0 %1372 }
 0x73b   :  { %1410 = vst [vmem:[%s2246_s12 + $0x28] sm:$0xff] %v1353_v31  ;;  %1414 = vst [vmem:[%s2246_s12 + $0x48] sm:$0xff] %v1373_v32 }
 0x73e   :  { %v1378_v33 = vpop.permute.xlu1 %1377 }
 0x73f   :  { %1415 = vst [vmem:[%s2246_s12 + $0x50] sm:$0xff] %v1378_v33 }
 0x742   :  { %v1368_v34 = vpop.permute.xlu1 %1367  ;;  %v1393_v35 = vpop.permute.xlu0 %1392 }
 0x743   :  { %1413 = vst [vmem:[%s2246_s12 + $0x40] sm:$0xff] %v1368_v34  ;;  %1418 = vst [vmem:[%s2246_s12 + $0x68] sm:$0xff] %v1393_v35 }
 0x746   :  { %v1388_v36 = vpop.permute.xlu1 %1387  ;;  %v1403_v37 = vpop.permute.xlu0 %1402 }
 0x747   :  { %1417 = vst [vmem:[%s2246_s12 + $0x60] sm:$0xff] %v1388_v36  ;;  %1420 = vst [vmem:[%s2246_s12 + $0x78] sm:$0xff] %v1403_v37 }
 0x74a   :  { %v1398_v38 = vpop.permute.xlu1 %1397 }
 0x74b   :  { %1419 = vst [vmem:[%s2246_s12 + $0x70] sm:$0xff] %v1398_v38 }

</bundles_post_ra>
